<compile_context>
chip_gen: v7x
topology: tpu7x:2x2x1
jax: 0.10.0
libtpu: 0.0.40
codegen_flags: <defaults>
</compile_context>

<pallas_src>
import numpy as np
import jax
import jax.numpy as jnp
from jax import lax
from jax.experimental import pallas as pl
from jax.experimental.pallas import tpu as pltpu

_LANES = 128
_DEFAULT_TILE_ROWS = 4096          # 4096 x 128 x 4B = 2 MiB per f32 block
_FADING_TILE_ROWS = 2048           # fading kernel keeps ~12 live full-block temps
_TWO_PI = float(2.0 * np.pi)
_SEED_MIX = -1640531535            # 0x9E3779B1 reinterpreted as int32
_VMEM_LIMIT = 48 * 1024 * 1024     # stays inside v7x's 64 MiB physical VMEM


# ---------------------------------------------------------------------------
# in-kernel standard-normal generation (TPU hardware PRNG + Box-Muller)
# ---------------------------------------------------------------------------
def _uniform01(shape):
    """Uniform [0, 1) from raw PRNG bits via the float-mantissa trick."""
    bits = pltpu.prng_random_bits(shape)
    if bits.dtype != jnp.uint32:
        bits = pltpu.bitcast(bits, jnp.uint32)
    mant = lax.shift_right_logical(bits, jnp.uint32(9))            # 23 bits
    return pltpu.bitcast(mant | jnp.uint32(0x3F800000), jnp.float32) - 1.0


def _std_normal_pair(shape):
    """Two independent N(0,1) draws per element (full Box-Muller pair)."""
    u1 = 1.0 - _uniform01(shape)                                   # (0, 1]
    u2 = _uniform01(shape)                                         # [0, 1)
    r = jnp.sqrt(-2.0 * jnp.log(u1))
    th = _TWO_PI * u2
    return r * jnp.cos(th), r * jnp.sin(th)


def _std_normal(shape):
    u1 = 1.0 - _uniform01(shape)
    u2 = _uniform01(shape)
    return jnp.sqrt(-2.0 * jnp.log(u1)) * jnp.cos(_TWO_PI * u2)


# ---------------------------------------------------------------------------
# kernel bodies (channel config baked in at trace time)
# ---------------------------------------------------------------------------
def _make_scale_kernel(sqrt_power):
    # noiseless, power != 1: normalize/de-normalize cancel -> out = sqrt(power)*x
    def kernel(x_ref, o_ref):
        o_ref[...] = (x_ref[...].astype(jnp.float32) * sqrt_power).astype(o_ref.dtype)
    return kernel


def _make_awgn_kernel(sqrt_power, on_tpu):
    # out = sqrt(power)*x + (sigma*sqrt(2*avg_pwr)) * z,  z ~ N(0,1)
    if on_tpu:
        def kernel(scale_ref, seed_ref, x_ref, o_ref):
            pltpu.prng_seed(seed_ref[0] ^ (pl.program_id(0) * _SEED_MIX))
            rows, lanes = x_ref.shape
            if rows % 2 == 0:                      # use BOTH Box-Muller outputs
                z1, z2 = _std_normal_pair((rows // 2, lanes))
                z = jnp.concatenate([z1, z2], axis=0)
            else:                                  # tiny odd-row block (rare)
                z = _std_normal((rows, lanes))
            o_ref[...] = (x_ref[...].astype(jnp.float32) * sqrt_power
                          + scale_ref[0] * z).astype(o_ref.dtype)
    else:
        def kernel(scale_ref, x_ref, z_ref, o_ref):    # portable / interpret path
            o_ref[...] = (x_ref[...].astype(jnp.float32) * sqrt_power
                          + scale_ref[0] * z_ref[...]).astype(o_ref.dtype)
    return kernel


def _fading_mix(x, z, h, a, b, sqrt_power, ns, roll_fn, recip_fn):
    """Fading update on an I/Q-interleaved slab (even lane = real, odd = imag).

    (tx*h + n)/h == tx + n*conj(h)/|h|^2, so
      out = sqrt(power)*x + ns * Re/Im{ z_c * conj(h_c) } / |h_c|^2
    where the complex pair lives in two adjacent lanes.  h, z are per-lane iid
    N(0,1) draws; the "partner" component of each pair is fetched via a +-1
    lane rotation (XLU) selected by lane parity.
    """
    lanes = x.shape[-1]
    even = (lax.broadcasted_iota(jnp.int32, x.shape, 1) & 1) == 0
    if a != 0.0 or b != 1.0:                       # rician: h = a + b*h_ray (real part gets +a)
        h = jnp.where(even, a + b * h, b * h)
    ph = jnp.where(even, roll_fn(h, lanes - 1), roll_fn(h, 1))   # other component of the pair
    pz = jnp.where(even, roll_fn(z, lanes - 1), roll_fn(z, 1))
    inv_den = recip_fn(h * h + ph * ph)            # 1 / |h|^2  (zero-forcing equalizer)
    # even lane (real): zr*hr + zi*hi   |  odd lane (imag): zi*hr - zr*hi
    num = jnp.where(even, z * h + pz * ph, z * ph - pz * h)
    return sqrt_power * x + ns * (num * inv_den)


def _make_fading_kernel(sqrt_power, a, b, on_tpu):
    if on_tpu:
        roll_fn = lambda v, s: pltpu.roll(v, s, 1)
        recip_fn = lambda v: pl.reciprocal(v, approx=True)        # EUP slot

        def kernel(scale_ref, seed_ref, x_ref, o_ref):
            pltpu.prng_seed(seed_ref[0] ^ (pl.program_id(0) * _SEED_MIX))
            h, z = _std_normal_pair(x_ref.shape)   # one Box-Muller pair / element
            y = _fading_mix(x_ref[...].astype(jnp.float32), z, h, a, b,
                            sqrt_power, scale_ref[0], roll_fn, recip_fn)
            o_ref[...] = y.astype(o_ref.dtype)
    else:
        roll_fn = lambda v, s: jnp.roll(v, s, axis=1)
        recip_fn = lambda v: 1.0 / v

        def kernel(scale_ref, x_ref, z_ref, h_ref, o_ref):        # portable path
            y = _fading_mix(x_ref[...].astype(jnp.float32), z_ref[...], h_ref[...],
                            a, b, sqrt_power, scale_ref[0], roll_fn, recip_fn)
            o_ref[...] = y.astype(o_ref.dtype)
    return kernel


# ---------------------------------------------------------------------------
# host-side glue
# ---------------------------------------------------------------------------
def _round_up(a, m):
    return ((a + m - 1) // m) * m


def _min_row_granularity(dtype):
    return {4: 8, 2: 16, 1: 32}.get(jnp.dtype(dtype).itemsize, 8)


def _choose_tile(rows, max_tile, gran):
    """Block rows: big tiles for large inputs, >=2 grid steps for medium ones."""
    max_tile = max(gran, (max_tile // gran) * gran)
    if rows > max_tile:
        return max_tile
    half = _round_up((rows + 1) // 2, gran)        # 2 steps -> v7x megacore
    return half if half < rows else rows           # tiny input: one full block


def _unslab(out, n, pad, orig_shape):
    flat = out.reshape(-1)
    if pad:
        flat = flat[:n]
    return flat.reshape(orig_shape)


def channel_apply(x, *, chan_type='awgn', chan_param=12.0, rician_k=2.0,
                  power=1.0, avg_pwr=None, key=None,
                  tile_rows=_DEFAULT_TILE_ROWS):
    """JAX/Pallas equivalent of Channel.forward -> (channel_rx, channel_usage)."""
    orig_shape = x.shape
    orig_dtype = x.dtype
    n = int(np.prod(orig_shape))
    assert n % 2 == 0, "flattened input length must be even (I/Q pairing)"
    c = n // 2                                     # complex symbols == channel_usage
    sqrt_power = float(np.sqrt(power))

    noiseless = chan_type in (0, 'noiseless')
    awgn = chan_type in (1, 'awgn')
    rayleigh = chan_type in (2, 'rayleigh')
    rician = chan_type in (3, 'rician')
    assert noiseless or awgn or rayleigh or rician, f"bad chan_type {chan_type}"

    if noiseless and sqrt_power == 1.0:
        return x, c                                # exact identity: no HBM pass at all

    if key is None:
        key = jax.random.PRNGKey(0)
    on_tpu = jax.default_backend() == 'tpu'

    # lane-dense slab (rows, 128); pad only to a multiple of 128 (usually zero)
    rows = -(-n // _LANES)
    pad = rows * _LANES - n
    xf = x.reshape(-1)
    if pad:
        xf = jnp.pad(xf, (0, pad))
    xs = xf.reshape(rows, _LANES)

    gran = _min_row_granularity(orig_dtype)
    fading = rayleigh or rician
    max_tile = min(tile_rows, _FADING_TILE_ROWS) if fading else tile_rows
    tile = _choose_tile(rows, max_tile, gran)
    grid = (-(-rows // tile),)                     # partial last block is fine (elementwise)

    slab_spec = pl.BlockSpec((tile, _LANES), lambda i: (i, 0))
    smem_spec = pl.BlockSpec(memory_space=pltpu.MemorySpace.SMEM)
    cparams = pltpu.CompilerParams(dimension_semantics=("parallel",),
                                   vmem_limit_bytes=_VMEM_LIMIT)
    out_sds = jax.ShapeDtypeStruct((rows, _LANES), orig_dtype)
    io_bytes = 2 * rows * _LANES * jnp.dtype(orig_dtype).itemsize

    if noiseless:                                  # power != 1: pure scale kernel
        out = pl.pallas_call(
            _make_scale_kernel(sqrt_power),
            out_shape=out_sds, grid=grid,
            in_specs=[slab_spec], out_specs=slab_spec,
            compiler_params=cparams,
            cost_estimate=pl.CostEstimate(flops=rows * _LANES, transcendentals=0,
                                          bytes_accessed=io_bytes),
        )(xs)
        return _unslab(out, n, pad, orig_shape), c

    # scalars: avg_pwr reduction hoisted out of the kernel; scales folded so
    #   out = sqrt(power)*x + (sigma*sqrt(2*avg_pwr)) * w
    sigma = float(np.sqrt(1.0 / (2.0 * 10.0 ** (float(chan_param) / 10.0))))
    if avg_pwr is None:
        avg = jnp.mean(jnp.square(x.astype(jnp.float32)))
    else:
        avg = jnp.asarray(avg_pwr, jnp.float32)
    noise_scale = (sigma * jnp.sqrt(2.0 * avg)).reshape(1).astype(jnp.float32)

    if awgn:
        # real & imag get identical scaling and iid noise -> no I/Q de-interleave
        kernel = _make_awgn_kernel(sqrt_power, on_tpu)
        ce = pl.CostEstimate(flops=6 * rows * _LANES,
                             transcendentals=3 * rows * _LANES,
                             bytes_accessed=io_bytes)
        if on_tpu:
            seed = jax.random.randint(key, (1,), 0, 2 ** 31 - 1, dtype=jnp.int32)
            out = pl.pallas_call(
                kernel, out_shape=out_sds, grid=grid,
                in_specs=[smem_spec, smem_spec, slab_spec], out_specs=slab_spec,
                compiler_params=cparams, cost_estimate=ce,
            )(noise_scale, seed, xs)
        else:
            z = jax.random.normal(key, (rows, _LANES), jnp.float32)
            out = pl.pallas_call(
                kernel, out_shape=out_sds, grid=grid,
                in_specs=[smem_spec, slab_spec, slab_spec], out_specs=slab_spec,
                compiler_params=cparams, cost_estimate=ce,
            )(noise_scale, xs, z)
        return _unslab(out, n, pad, orig_shape), c

    # rayleigh / rician: interleaved slab, lane-pair equalizer in-kernel
    if rician:
        k = float(rician_k)
        a = float(np.sqrt(k / (k + 1.0)))
        b = float(np.sqrt(1.0 / (k + 1.0)) / np.sqrt(2.0))
    else:
        a, b = 0.0, 1.0          # reference rayleigh draws h components with std 1
    kernel = _make_fading_kernel(sqrt_power, a, b, on_tpu)
    ce = pl.CostEstimate(flops=16 * rows * _LANES,
                         transcendentals=6 * rows * _LANES,
                         bytes_accessed=io_bytes)
    if on_tpu:
        seed = jax.random.randint(key, (1,), 0, 2 ** 31 - 1, dtype=jnp.int32)
        out = pl.pallas_call(
            kernel, out_shape=out_sds, grid=grid,
            in_specs=[smem_spec, smem_spec, slab_spec], out_specs=slab_spec,
            compiler_params=cparams, cost_estimate=ce,
        )(noise_scale, seed, xs)
    else:
        kz, kh = jax.random.split(key)
        z = jax.random.normal(kz, (rows, _LANES), jnp.float32)
        h = jax.random.normal(kh, (rows, _LANES), jnp.float32)
        out = pl.pallas_call(
            kernel, out_shape=out_sds, grid=grid,
            in_specs=[smem_spec, slab_spec, slab_spec, slab_spec], out_specs=slab_spec,
            compiler_params=cparams, cost_estimate=ce,
        )(noise_scale, xs, z, h)
    return _unslab(out, n, pad, orig_shape), c


# ---------------------------------------------------------------------------
# self-test
# ---------------------------------------------------------------------------
if __name__ == "__main__":
    key = jax.random.PRNGKey(0)
    xkey, k1, k2, k3, k4, bkey = jax.random.split(key, 6)

    x = jax.random.normal(xkey, (2, 4, 16, 16), jnp.float32)     # NCHW

    # noiseless, power=1: normalize/de-normalize cancel -> exact identity
    y0, u0 = channel_apply(x, chan_type='noiseless', chan_param=12.0, key=k1)
    assert y0.shape == x.shape and u0 == x.size // 2
    np.testing.assert_allclose(np.asarray(y0), np.asarray(x), rtol=0, atol=0)

    # noiseless, power=4: scale-only kernel -> exactly 2*x
    y0b, _ = channel_apply(x, chan_type='noiseless', power=4.0, key=k1)
    jax.block_until_ready(y0b)
    np.testing.assert_allclose(np.asarray(y0b), 2.0 * np.asarray(x),
                               rtol=1e-6, atol=1e-6)

    # awgn: residual noise statistics must match sigma * sqrt(2*mean(x^2))
    snr_db = 12.0
    y1, u1 = channel_apply(x, chan_type='awgn', chan_param=snr_db, key=k2)
    jax.block_until_ready(y1)
    assert u1 == x.size // 2
    sigma = np.sqrt(1.0 / (2.0 * 10.0 ** (snr_db / 10.0)))
    expect_std = sigma * np.sqrt(2.0 * np.mean(np.asarray(x) ** 2))
    resid = np.asarray(y1) - np.asarray(x)
    assert abs(resid.std() - expect_std) < 0.15 * expect_std
    assert abs(resid.mean()) < 0.2 * expect_std

    # larger awgn run exercises a multi-step grid (rows=2048 -> 2 blocks)
    xb = jax.random.normal(bkey, (4, 16, 64, 64), jnp.float32)
    yb, _ = channel_apply(xb, chan_type='awgn', chan_param=snr_db, key=k3)
    jax.block_until_ready(yb)
    expect_std_b = sigma * np.sqrt(2.0 * np.mean(np.asarray(xb) ** 2))
    residb = np.asarray(yb) - np.asarray(xb)
    assert abs(residb.std() - expect_std_b) < 0.05 * expect_std_b

    # rayleigh / rician fading paths: run, check shape & finiteness
    y2, _ = channel_apply(x, chan_type='rayleigh', chan_param=snr_db, key=k3)
    y3, _ = channel_apply(x, chan_type='rician', chan_param=snr_db,
                          rician_k=2.0, key=k4)
    jax.block_until_ready((y2, y3))
    assert y2.shape == x.shape and y3.shape == x.shape
    assert np.isfinite(np.asarray(y2)).all() and np.isfinite(np.asarray(y3)).all()

    print("KERNEL_OK")
</pallas_src>

<mosaic_0001>
module attributes {stable_mosaic.version = 11 : i64} {
  func.func @kernel(%arg0: i32, %arg1: memref<8x128xf32, #tpu.memory_space<vmem>>, %arg2: memref<8x128xf32, #tpu.memory_space<vmem>>) attributes {dimension_semantics = [#tpu.dimension_semantics<parallel>], iteration_bounds = array<i64: 2>, scalar_prefetch = 0 : i64, scratch_operands = 0 : i64, tpu.core_type = #tpu.core_type<tc>, window_params = [{transform_indices = @transform_0, window_bounds = array<i64: 8, 128>}, {transform_indices = @transform_1, window_bounds = array<i64: 8, 128>}]} {
    %c0 = arith.constant 0 : index
    %c0_0 = arith.constant 0 : index
    %0 = vector.load %arg1[%c0, %c0_0] : memref<8x128xf32, #tpu.memory_space<vmem>>, vector<8x128xf32>
    %cst = arith.constant 2.000000e+00 : f32
    %1 = vector.broadcast %cst : f32 to vector<8x128xf32>
    %2 = arith.mulf %0, %1 : vector<8x128xf32>
    %c0_1 = arith.constant 0 : index
    %c0_2 = arith.constant 0 : index
    %3 = vector.load %arg2[%c0_1, %c0_2] : memref<8x128xf32, #tpu.memory_space<vmem>>, vector<8x128xf32>
    tpu.vector_store %arg2[%c0_1, %c0_2], %2 {strides = array<i32>} : memref<8x128xf32, #tpu.memory_space<vmem>>, vector<8x128xf32>,
    return
  }
  func.func @transform_0(%arg0: i32) -> (i32, i32) {
    %c0_i32 = arith.constant 0 : i32
    %c0_i32_0 = arith.constant 0 : i32
    return %arg0, %c0_i32 : i32, i32
  }
  func.func @transform_1(%arg0: i32) -> (i32, i32) {
    %c0_i32 = arith.constant 0 : i32
    %c0_i32_0 = arith.constant 0 : i32
    return %arg0, %c0_i32 : i32, i32
  }
}

</mosaic_0001>

<bundles_post_ra>
// kernel: tpu_custom_call.1
= control target key start
LH: loop header
LB: loop body
LE: loop exit
PB: predicated region body
PF: predicated region fallthrough
CT: control target
= control target key end

     0   :  { %6 = vsyncpa [#allocation3], 0  ;;  %s548_s0 = inlined_call_operand.hbm [shape: f32[16,128], index: 0, kind: input, shape index: {}]   ;;  %s549_s1 = inlined_call_operand.hbm [shape: f32[16,128], index: 1, kind: output, shape index: {}]  }
   0x1   :  { %8 = vsyncpa [#allocation3 + $0x1], 0 }
   0x2   :  { %9 = vsyncpa [#allocation4], 0 }
   0x3   :  { %11 = vsyncpa [#allocation4 + $0x1], 0  ;;  %s387_s6 = smov 0   ;;  %s389_s7 = smov 0  }
   0x4   :  { %s391_s8 = smov 0   ;;  %s393_s9 = smov 0  }
   0x5 LB: > { %s408_s10 = sadd.s32 4294967295, %s373_s9   ;;  %s219_s11 = sadd.s32 4294967294, %s373_s9   ;;  %s373_s9 = sphi %s393_s9, %s564_s9   ;;  %s369_s8 = sphi %s391_s8, %s563_s8   ;;  %s365_s7 = sphi %s389_s7, %s562_s7   ;;  %s361_s6 = sphi %s387_s6, %s561_s6  }
   0x6   : > { %s412_s12 = sadd.s32 1, %s373_s9   ;;  %s24_s13 = sadd.s32 1, %s369_s8 }
   0x7   : > { %s21_s14 = ssub.s32 %s373_s9, %s412_s12  ;;  %p31_p0 = scmp.ne.s32.totalorder %s369_s8, %s365_s7 }
   0x8   : > { %p22_p1 = scmp.eq.s32.totalorder %s21_s14, 0  ;;  %p32_p2 = scmp.eq.s32.totalorder %s373_s9, 0 }
   0x9   : > { %p37_p3 = scmp.ne.s32.totalorder %s365_s7, %s361_s6  ;;  %p38_p4 = scmp.eq.s32.totalorder %s408_s10, 0 }
   0xa   : > { %s424_s15 = scalar_select %p22_p1, %s369_s8, %s24_s13  }
   0xb   : > { %p426_p5 = por %p32_p2, %p31_p0  ;;  %p430_p6 = por %p38_p4, %p37_p3 }
   0xc   : > { %p61_p7 = scmp.eq.s32.totalorder %s408_s10, 1  ;;  %p67_p8 = scmp.eq.s32.totalorder %s219_s11, 1 }
   0xd   : > { %p243_p10 = scmp.lt.s32.totalorder %s373_s9, 2  ;;  %s87_s20 = sand.u32 1, %s369_s8  }
   0xe   : > { %p437_p11 = por %p61_p7, %p31_p0  ;;  %p441_p12 = por %p67_p8, %p37_p3 }
   0xf   : > { %s223_s21 = sshll.u32 %s373_s9, 7  ;;  %s222_s22 = sshll.u32 %s87_s20, 3 }
  0x10   : > { %s553_s18 = scalar_select %p437_p11, 1, 0 }
  0x11   : > { %s554_s19 = scalar_select %p441_p12, 1, 0 }
  0x12   : > { %s450_s25 = scalar_lea.hbm %s548_s0, %s223_s21  ;;  %s91_s26 = scalar_lea.vmem [#allocation2], %s222_s22 }
  0x13   : > { %s98_s27 = sshll.u32 %s91_s26, 4  ;;  %p454_p13 = pnand %p243_p10, %p426_p5  ;;  %s458_s27 = int_to_ptr.vmem [resolvable:$true] %s98_s27 }
  0x14   : > { %s88_s29 = scalar_lea.sflag [#allocation3], %s87_s20  ;;  %s277_s30 = scalar_lea.hbm %s450_s25, 128 }
  0x15   : > { %p278_p2 = scmp.ne.s32.totalorder %s450_s25, %s277_s30  ;;  %p279_p3 = pneg %p454_p13 }
  0x16   : > { %s282_s4 = scalar_lea.hbm %s548_s0, 256  ;;  %p283_p5 = scmp.lt.u32.totalorder %s450_s25, %s548_s0 }
  0x17   : > { %p280_p4 = pnand %p279_p3, %p278_p2  ;;  %p284_p8 = scmp.lt.u32.totalorder %s282_s4, %s277_s30 }
  0x18   : > { %p286_p9 = scmp.lt.u32.totalorder %s277_s30, %s450_s25 }
  0x19   : > { %p281_p7 = pneg %p280_p4  ;;  %p285_p10 = por %p284_p8, %p283_p5 }
  0x1b   : > { %p287_p0 = por %p286_p9, %p285_p10 }
  0x1d   : > { %p288_p1 = pnand %p287_p0, %p281_p7 }
  0x1f   : > { %291 = shalt.err (!%p288_p1)
}
  0x20   : > { %s292_s13 = scalar_lea.vmem %s458_s27, 128  ;;  %s375_s14 = smov [#allocation2]  }
  0x21   : > { %p293_p2 = scmp.ne.s32.totalorder %s458_s27, %s292_s13  ;;  %s297_s16 = sshll.u32 %s375_s14, 4  ;;  %s298_s16 = int_to_ptr.vmem [resolvable:$false] %s297_s16 }
  0x22   : > { %s299_s20 = scalar_lea.vmem %s298_s16, 256  ;;  %p300_p11 = scmp.lt.s32.totalorder %s458_s27, %s298_s16 }
  0x23   : > { %p295_p4 = pnand %p293_p2, %p279_p3  ;;  %p301_p5 = scmp.lt.s32.totalorder %s299_s20, %s292_s13 }
  0x25   : > { %p296_p12 = pneg %p295_p4  ;;  %p302_p8 = por %p301_p5, %p300_p11 }
  0x27   : > { %p303_p9 = pnand %p302_p8, %p296_p12 }
  0x29   : > { %306 = shalt.err (!%p303_p9)
}
  0x2a   : > { %238 = dma.hbm_to_vmem [thread:$0]  (!%p454_p13), %s450_s25, 128, %s458_s27, %s88_s29  }
  0x2b   : > { %p556_p0 = scmp.lt.s32.totalorder %s373_s9, 3  ;;  %p557_p1 = scmp.ge.s32.totalorder %s373_s9, 1 }
  0x2d   : > { %p104_p3 = pnand %p557_p1, %p556_p0 }
  0x2e   : > { %s492_s21 = sand.u32 (!%p104_p3), 1, %s365_s7  }
  0x2f   : > { %107 = sbr.rel (%p104_p3) target bundleno = 81 (0x51), region = 24  ;;  %s225_s22 = sshll.u32 (!%p104_p3), %s492_s21, 3 }
  0x30   : > { %s110_s23 = scalar_lea.sflag (!%p104_p3), [#allocation3], %s492_s21  ;;  %s113_s24 = scalar_lea.vmem (!%p104_p3), [#allocation2], %s225_s22 }
  0x36   : > { %352 = dma.done.wait (%p430_p6), %s110_s23, 128  }
  0x37   : > { %354 = vsyncadd (%p430_p6), %s110_s23, 4294967168  ;;  %s131_s25 = scalar_lea.vmem [#allocation5], %s225_s22  ;;  %s228_s27 = sshll.u32 %s408_s10, 7  ;;  %v132_v0 = vld [vmem:[%s113_s24] sm:$0xff] }
  0x38   : > { %s149_s26 = sshll.u32 %s131_s25, 4  ;;  %v133_v1 = vmul.f32 2.0, %v132_v0  ;;  %s506_s30 = scalar_lea.hbm %s549_s1, %s228_s27  ;;  %s501_s26 = int_to_ptr.vmem [resolvable:$true] %s149_s26 }
  0x39   : > { %s136_s17 = scalar_lea.sflag [#allocation4], %s492_s21  ;;  %s307_s2 = scalar_lea.vmem %s501_s26, 128 }
  0x3a   : > { %134 = vst [vmem:[%s131_s25] sm:$0xff] %v133_v1  ;;  %p308_p6 = scmp.ne.s32.totalorder %s501_s26, %s307_s2  ;;  %p558_p11 = scmp.ne.s32.totalorder %s553_s18, 0 }
  0x3b   : > { %s376_s10 = smov [#allocation5]  }
  0x3c   : > { %p309_p12 = pnand %p308_p6, %p558_p11  ;;  %s311_s3 = sshll.u32 %s376_s10, 4  ;;  %s312_s3 = int_to_ptr.vmem [resolvable:$false] %s311_s3 }
  0x3d   : > { %s313_s4 = scalar_lea.vmem %s312_s3, 256  ;;  %p314_p7 = scmp.lt.s32.totalorder %s501_s26, %s312_s3 }
  0x3e   : > { %p310_p13 = pneg %p309_p12  ;;  %p315_p10 = scmp.lt.s32.totalorder %s313_s4, %s307_s2 }
  0x40   : > { %p316_p2 = por %p315_p10, %p314_p7 }
  0x42   : > { %p317_p4 = pnand %p316_p2, %p310_p13 }
  0x44   : > { %320 = shalt.err (!%p317_p4)
}
  0x45   : > { %s321_s5 = scalar_lea.hbm %s506_s30, 128  ;;  %s325_s14 = scalar_lea.hbm %s549_s1, 256 }
  0x46   : > { %p322_p5 = scmp.ne.s32.totalorder %s506_s30, %s321_s5  ;;  %p326_p0 = scmp.lt.u32.totalorder %s506_s30, %s549_s1 }
  0x47   : > { %p327_p1 = scmp.lt.u32.totalorder %s325_s14, %s321_s5  ;;  %p329_p6 = scmp.lt.u32.totalorder %s321_s5, %s506_s30 }
  0x48   : > { %p323_p8 = pnand %p322_p5, %p558_p11 }
  0x49   : > { %p328_p3 = por %p327_p1, %p326_p0 }
  0x4a   : > { %p324_p9 = pneg %p323_p8 }
  0x4b   : > { %p330_p12 = por %p329_p6, %p328_p3 }
  0x4d   : > { %p331_p13 = pnand %p330_p12, %p324_p9 }
  0x4f   : > { %334 = shalt.err (!%p331_p13)
}
  0x50   : > { %233 = dma.vmem_to_hbm [thread:$0]  (%p558_p11), %s501_s26, 128, %s506_s30, %s136_s17  }
  0x51 PF: > { %s161_s21 = sand.u32 1, %s361_s6   ;;  %p559_p7 = scmp.ne.s32.totalorder %s554_s19, 0 }
  0x52   : > { %p560_p10 = scmp.ge.s32.totalorder %s373_s9, 2  ;;  %s162_s22 = scalar_lea.sflag [#allocation4], %s161_s21 }
  0x54   : > { %p240_p2 = pnand %p560_p10, %p559_p7 }
  0x56   : > { %356 = dma.done.wait (!%p240_p2), %s162_s22, 128  }
  0x57   : > { %358 = vsyncadd (!%p240_p2), %s162_s22, 4294967168  ;;  %p14_p4 = scmp.ge.s32.totalorder %s412_s12, 4   ;;  %s561_s6 = smov %s365_s7 }
  0x58   : > { %s562_s7 = smov %s369_s8  ;;  %s563_s8 = smov %s424_s15 }
  0x59   : > { %s564_s9 = smov %s412_s12  ;;  %16 = sbr.rel (!%p14_p4) target bundleno = 5 (0x5), region = 69 }
  0x60   :  { %167 = vsyncpa [#allocation3], 1 }
  0x61   :  { %169 = vsyncpa [#allocation3 + $0x1], 1 }
  0x62   :  { %170 = vsyncpa [#allocation4], 1 }
  0x63   :  { %172 = vsyncpa [#allocation4 + $0x1], 1 }

</bundles_post_ra>
